<compile_context>
chip_gen: v7x
topology: tpu7x:2x2x1
jax: 0.10.0
libtpu: 0.0.40
codegen_flags: <defaults>
</compile_context>

<pallas_src>
import jax
import jax.numpy as jnp
from jax.experimental import pallas as pl
from jax.experimental.pallas import tpu as pltpu


def gat_kernel(a_ref, wh_ref, esrc_ref, edst_ref, diag_ref, o_ref):
    f32 = jnp.float32
    A_blk = a_ref[0]                    # (tile_n, N)  int8 adjacency row strip
    Wh = wh_ref[0]                      # (N, F_pad)   bf16, resident per batch
    e_src = esrc_ref[0]                 # (tile_n, 1)  f32 (bias already folded in)
    e_dst = edst_ref[0]                 # (1, N)       f32
    diag = diag_ref[0]                  # (tile_n, 1)  f32 diag(A) for this strip

    # attention logits + leaky_relu(0.2) (maximum form: one VPU op)
    z = e_src + e_dst                                   # (tile_n, N)
    scores = jnp.maximum(z, 0.2 * z)

    # masked softmax over neighbors j (max over the unmasked row, matching spec)
    scores = scores - jnp.max(scores, axis=-1, keepdims=True)
    exps = jnp.exp(scores)
    masked = jnp.where(A_blk != 0, exps, 0.0)           # (tile_n, N) f32

    denom = jnp.sum(masked, axis=-1, keepdims=True) + (1.0 - diag) + 1e-6
    attn = masked * pl.reciprocal(denom, approx=True)   # divide on the EUP slot
    # (reference's extra `* A` is idempotent for the 0/1 adjacency assumed here)

    # single well-shaped MXU matmul, bf16 operands, f32 accumulation
    out = jnp.dot(attn.astype(jnp.bfloat16), Wh, preferred_element_type=f32)
    o_ref[0] = out.astype(o_ref.dtype)


def _vmem_capacity_bytes():
    try:
        return int(pltpu.get_tpu_info().vmem_capacity_bytes)
    except Exception:
        return 64 * 1024 * 1024  # conservative fallback (v7x-sized)


def gat(A, x, W, att_weight, att_bias, *, tile_n=None):
    """GAT forward. A: (B,N,N), x: (B,N,F_in), W: (F_in,F_out),
    att_weight: (1, 2*F_out) [nn.Linear(2*F_out,1) weight], att_bias: (1,)."""
    B, N, F_in = x.shape
    F_out = W.shape[1]
    assert att_weight.shape == (1, 2 * F_out)

    f32 = jnp.float32
    F_pad = ((F_out + 127) // 128) * 128       # lane-dense output width (>= 128)

    vmem_cap = _vmem_capacity_bytes()
    # never request the full physical VMEM (v7x = 64 MiB total)
    vmem_limit = min(int(vmem_cap * 3 // 4), 100 * 1024 * 1024)

    if tile_n is None:
        # large tiles on 128 MiB parts (v5e/v6e), smaller on v7x
        row_cap = 512 if vmem_cap >= 120 * 1024 * 1024 else 128
        tile_n = min(N, row_cap)
    assert N % tile_n == 0, "tile_n must divide N"
    assert tile_n == N or tile_n % 32 == 0, "tile_n must be a multiple of 32 (int8 sublane tiling)"

    # ---- per-batch precompute in plain XLA (hoisted out of the kernel) ----
    xf = x.astype(f32)
    Wf = W.astype(f32)
    a_vec = att_weight.reshape(-1).astype(f32)
    a_src, a_dst = a_vec[:F_out], a_vec[F_out:]
    bias = jnp.asarray(att_bias, f32)[0]

    Wh = jnp.einsum("bnf,fo->bno", xf, Wf)                              # (B, N, F_out) f32
    e_src = (jnp.einsum("bnf,f->bn", Wh, a_src) + bias)[..., None]      # (B, N, 1)
    e_dst = jnp.einsum("bnf,f->bn", Wh, a_dst)[:, None, :]              # (B, 1, N)
    diagA = jnp.diagonal(A, axis1=1, axis2=2).astype(f32)[..., None]    # (B, N, 1)

    # lane-padded bf16 Wh for the kernel matmul RHS (padded columns are zero)
    Wh_bf = jnp.pad(Wh, ((0, 0), (0, 0), (0, F_pad - F_out))).astype(jnp.bfloat16)

    # int8 adjacency: exact for 0/1 masks, quarters the dominant (B,N,N) HBM read
    A_i8 = A.astype(jnp.int8)

    grid = (B, N // tile_n)
    cost = pl.CostEstimate(
        flops=int(B * (2 * N * N * F_pad + 8 * N * N)),
        transcendentals=int(B * N * N),
        bytes_accessed=int(A_i8.size                       # int8 adjacency
                           + Wh_bf.size * 2                # bf16 Wh
                           + (e_src.size + e_dst.size + diagA.size) * 4
                           + B * N * F_pad * 4),           # f32 output slab
    )

    out_pad = pl.pallas_call(
        gat_kernel,
        out_shape=jax.ShapeDtypeStruct((B, N, F_pad), x.dtype),
        grid=grid,
        in_specs=[
            pl.BlockSpec((1, tile_n, N), lambda b, i: (b, i, 0)),     # A row strip (int8)
            pl.BlockSpec((1, N, F_pad), lambda b, i: (b, 0, 0)),      # Wh (bf16, resident per batch)
            pl.BlockSpec((1, tile_n, 1), lambda b, i: (b, i, 0)),     # e_src row tile
            pl.BlockSpec((1, 1, N), lambda b, i: (b, 0, 0)),          # e_dst full row (resident)
            pl.BlockSpec((1, tile_n, 1), lambda b, i: (b, i, 0)),     # diag(A) row tile
        ],
        out_specs=pl.BlockSpec((1, tile_n, F_pad), lambda b, i: (b, i, 0)),
        compiler_params=pltpu.CompilerParams(
            dimension_semantics=("parallel", "parallel"),
            vmem_limit_bytes=vmem_limit),
        cost_estimate=cost,
    )(A_i8, Wh_bf, e_src, e_dst, diagA)

    return out_pad[..., :F_out]


def gat_ref(A, x, W, att_weight, att_bias):
    """Pure-JAX f32 reference mirroring the PyTorch forward (materializes the concat)."""
    B, N, _ = x.shape
    Wh = jnp.einsum("bnf,fo->bno", x, W)
    F_out = Wh.shape[-1]
    wh_i = jnp.broadcast_to(Wh[:, :, None, :], (B, N, N, F_out))
    wh_j = jnp.broadcast_to(Wh[:, None, :, :], (B, N, N, F_out))
    wh_cat = jnp.concatenate([wh_i, wh_j], axis=-1)                 # (B, N, N, 2*F_out)
    e = jnp.einsum("bijk,k->bij", wh_cat, att_weight[0]) + att_bias[0]
    e = jnp.where(e > 0, e, 0.2 * e)                                # leaky_relu(0.2)
    e = e - jnp.max(e, axis=-1, keepdims=True)
    exps = jnp.exp(e)
    masked = exps * A
    sums = jnp.sum(masked, axis=2, keepdims=True)
    diag = jnp.diagonal(A, axis1=1, axis2=2)[..., None]             # (B, N, 1)
    sums = sums + (1.0 - diag) + 1e-6
    attn = masked / sums * A
    return jnp.einsum("bij,bjf->bif", attn, Wh)


if __name__ == "__main__":
    B, N, F_IN, F_OUT, TILE_N = 2, 128, 16, 32, 64   # grid (2,2): >=4 parallel work items

    key = jax.random.PRNGKey(0)
    k_a, k_x, k_w, k_aw, k_ab = jax.random.split(key, 5)

    # deterministic synthetic graph: sparse binary adjacency + self loops
    A = (jax.random.uniform(k_a, (B, N, N)) < 0.2).astype(jnp.float32)
    A = jnp.maximum(A, jnp.eye(N, dtype=jnp.float32)[None])

    x = jax.random.normal(k_x, (B, N, F_IN), dtype=jnp.float32)

    # W: xavier_normal_ init on (F_IN, F_OUT)
    std = (2.0 / (F_IN + F_OUT)) ** 0.5
    W = std * jax.random.normal(k_w, (F_IN, F_OUT), dtype=jnp.float32)

    # attention_mechanism = nn.Linear(2*F_OUT, 1): default init U(-k, k), k = 1/sqrt(2*F_OUT)
    bound = 1.0 / (2.0 * F_OUT) ** 0.5
    att_weight = jax.random.uniform(k_aw, (1, 2 * F_OUT), minval=-bound, maxval=bound,
                                    dtype=jnp.float32)
    att_bias = jax.random.uniform(k_ab, (1,), minval=-bound, maxval=bound,
                                  dtype=jnp.float32)

    out = gat(A, x, W, att_weight, att_bias, tile_n=TILE_N)
    out = jax.block_until_ready(out)

    ref = gat_ref(A, x, W, att_weight, att_bias)
    assert out.shape == (B, N, F_OUT)
    max_err = float(jnp.max(jnp.abs(out - ref)))
    # Tolerance accounts for the (perf-review requested) bf16 operands in the
    # attn @ Wh matmul (~2^-8 relative) and the EUP approx reciprocal; with both
    # reverted to f32 the kernel matches the reference to ~1e-5.
    assert jnp.allclose(out, ref, atol=2e-2, rtol=1e-2), (
        f"mismatch vs reference, max abs err {max_err}")

    print("KERNEL_OK")
</pallas_src>

<mosaic_0001>
module attributes {stable_mosaic.version = 11 : i64} {
  func.func @gat_kernel(%arg0: i32, %arg1: i32, %arg2: memref<1x64x128xi8, #tpu.memory_space<vmem>>, %arg3: memref<1x128x128xbf16, #tpu.memory_space<vmem>>, %arg4: memref<1x64x1xf32, #tpu.memory_space<vmem>>, %arg5: memref<1x1x128xf32, #tpu.memory_space<vmem>>, %arg6: memref<1x64x1xf32, #tpu.memory_space<vmem>>, %arg7: memref<1x64x128xf32, #tpu.memory_space<vmem>>) attributes {dimension_semantics = [#tpu.dimension_semantics<parallel>, #tpu.dimension_semantics<parallel>], iteration_bounds = array<i64: 2, 2>, scalar_prefetch = 0 : i64, scratch_operands = 0 : i64, tpu.core_type = #tpu.core_type<tc>, window_params = [{transform_indices = @transform_0, window_bounds = array<i64: 1, 64, 128>}, {transform_indices = @transform_1, window_bounds = array<i64: 1, 128, 128>}, {transform_indices = @transform_2, window_bounds = array<i64: 1, 64, 1>}, {transform_indices = @transform_3, window_bounds = array<i64: 1, 1, 128>}, {transform_indices = @transform_4, window_bounds = array<i64: 1, 64, 1>}, {transform_indices = @transform_5, window_bounds = array<i64: 1, 64, 128>}]} {
    %c0 = arith.constant 0 : index
    %c0_0 = arith.constant 0 : index
    %c0_1 = arith.constant 0 : index
    %0 = vector.load %arg2[%c0, %c0_0, %c0_1] : memref<1x64x128xi8, #tpu.memory_space<vmem>>, vector<1x64x128xi8>
    %1 = vector.shape_cast %0 : vector<1x64x128xi8> to vector<64x128xi8>
    %c0_2 = arith.constant 0 : index
    %c0_3 = arith.constant 0 : index
    %c0_4 = arith.constant 0 : index
    %2 = vector.load %arg3[%c0_2, %c0_3, %c0_4] : memref<1x128x128xbf16, #tpu.memory_space<vmem>>, vector<1x128x128xbf16>
    %3 = vector.shape_cast %2 : vector<1x128x128xbf16> to vector<128x128xbf16>
    %c0_5 = arith.constant 0 : index
    %c0_6 = arith.constant 0 : index
    %c0_7 = arith.constant 0 : index
    %4 = vector.load %arg4[%c0_5, %c0_6, %c0_7] : memref<1x64x1xf32, #tpu.memory_space<vmem>>, vector<1x64x1xf32>
    %5 = vector.shape_cast %4 : vector<1x64x1xf32> to vector<64x1xf32>
    %c0_8 = arith.constant 0 : index
    %c0_9 = arith.constant 0 : index
    %c0_10 = arith.constant 0 : index
    %6 = vector.load %arg5[%c0_8, %c0_9, %c0_10] : memref<1x1x128xf32, #tpu.memory_space<vmem>>, vector<1x1x128xf32>
    %7 = vector.shape_cast %6 : vector<1x1x128xf32> to vector<1x128xf32>
    %c0_11 = arith.constant 0 : index
    %c0_12 = arith.constant 0 : index
    %c0_13 = arith.constant 0 : index
    %8 = vector.load %arg6[%c0_11, %c0_12, %c0_13] : memref<1x64x1xf32, #tpu.memory_space<vmem>>, vector<1x64x1xf32>
    %9 = vector.shape_cast %8 : vector<1x64x1xf32> to vector<64x1xf32>
    %10 = vector.broadcast %5 : vector<64x1xf32> to vector<64x128xf32>
    %11 = vector.broadcast %7 : vector<1x128xf32> to vector<64x128xf32>
    %12 = arith.addf %10, %11 : vector<64x128xf32>
    %cst = arith.constant 2.000000e-01 : f32
    %13 = vector.broadcast %cst : f32 to vector<64x128xf32>
    %14 = arith.mulf %13, %12 : vector<64x128xf32>
    %15 = arith.maximumf %12, %14 : vector<64x128xf32>
    %cst_14 = arith.constant dense<0xFF800000> : vector<64xf32>
    %16 = vector.multi_reduction <maximumf>, %15, %cst_14 [1] : vector<64x128xf32> to vector<64xf32>
    %17 = vector.shape_cast %16 : vector<64xf32> to vector<64x1xf32>
    %18 = vector.broadcast %17 : vector<64x1xf32> to vector<64x128xf32>
    %19 = arith.subf %15, %18 : vector<64x128xf32>
    %20 = math.exp %19 : vector<64x128xf32>
    %c0_i8 = arith.constant 0 : i8
    %21 = vector.broadcast %c0_i8 : i8 to vector<64x128xi8>
    %22 = arith.cmpi ne, %1, %21 : vector<64x128xi8>
    %cst_15 = arith.constant 0.000000e+00 : f32
    %23 = vector.broadcast %cst_15 : f32 to vector<64x128xf32>
    %24 = arith.select %22, %20, %23 : vector<64x128xi1>, vector<64x128xf32>
    %cst_16 = arith.constant dense<0.000000e+00> : vector<64xf32>
    %25 = vector.multi_reduction <add>, %24, %cst_16 [1] : vector<64x128xf32> to vector<64xf32>
    %26 = vector.shape_cast %25 : vector<64xf32> to vector<64x1xf32>
    %cst_17 = arith.constant 1.000000e+00 : f32
    %27 = vector.broadcast %cst_17 : f32 to vector<64x1xf32>
    %28 = arith.subf %27, %9 : vector<64x1xf32>
    %29 = arith.addf %26, %28 : vector<64x1xf32>
    %cst_18 = arith.constant 9.99999997E-7 : f32
    %30 = vector.broadcast %cst_18 : f32 to vector<64x1xf32>
    %31 = arith.addf %29, %30 : vector<64x1xf32>
    %32 = tpu.reciprocal %31 {approx = true} : vector<64x1xf32> -> vector<64x1xf32>
    %33 = vector.broadcast %32 : vector<64x1xf32> to vector<64x128xf32>
    %34 = arith.mulf %24, %33 : vector<64x128xf32>
    %35 = arith.truncf %34 : vector<64x128xf32> to vector<64x128xbf16>
    %cst_19 = arith.constant dense<0.000000e+00> : vector<64x128xf32>
    %36 = tpu.matmul %35, %3, %cst_19 {dimension_numbers = #tpu.dot_dimension_numbers<[1], [0], [0], [1], [0, 0, 1, 1], [], []>} : vector<64x128xbf16>, vector<128x128xbf16>, vector<64x128xf32> -> vector<64x128xf32>
    %c0_20 = arith.constant 0 : index
    %c0_21 = arith.constant 0 : index
    %c0_22 = arith.constant 0 : index
    %37 = vector.load %arg7[%c0_20, %c0_21, %c0_22] : memref<1x64x128xf32, #tpu.memory_space<vmem>>, vector<1x64x128xf32>
    %38 = vector.shape_cast %37 : vector<1x64x128xf32> to vector<64x128xf32>
    %39 = vector.shape_cast %36 : vector<64x128xf32> to vector<1x64x128xf32>
    tpu.vector_store %arg7[%c0_20, %c0_21, %c0_22], %39 {strides = array<i32>} : memref<1x64x128xf32, #tpu.memory_space<vmem>>, vector<1x64x128xf32>,
    return
  }
  func.func @transform_0(%arg0: i32, %arg1: i32) -> (i32, i32, i32) {
    %c0_i32 = arith.constant 0 : i32
    %c0_i32_0 = arith.constant 0 : i32
    return %arg0, %arg1, %c0_i32 : i32, i32, i32
  }
  func.func @transform_1(%arg0: i32, %arg1: i32) -> (i32, i32, i32) {
    %c0_i32 = arith.constant 0 : i32
    %c0_i32_0 = arith.constant 0 : i32
    %c0_i32_1 = arith.constant 0 : i32
    return %arg0, %c0_i32, %c0_i32_0 : i32, i32, i32
  }
  func.func @transform_2(%arg0: i32, %arg1: i32) -> (i32, i32, i32) {
    %c0_i32 = arith.constant 0 : i32
    %c0_i32_0 = arith.constant 0 : i32
    return %arg0, %arg1, %c0_i32 : i32, i32, i32
  }
  func.func @transform_3(%arg0: i32, %arg1: i32) -> (i32, i32, i32) {
    %c0_i32 = arith.constant 0 : i32
    %c0_i32_0 = arith.constant 0 : i32
    %c0_i32_1 = arith.constant 0 : i32
    return %arg0, %c0_i32, %c0_i32_0 : i32, i32, i32
  }
  func.func @transform_4(%arg0: i32, %arg1: i32) -> (i32, i32, i32) {
    %c0_i32 = arith.constant 0 : i32
    %c0_i32_0 = arith.constant 0 : i32
    return %arg0, %arg1, %c0_i32 : i32, i32, i32
  }
  func.func @transform_5(%arg0: i32, %arg1: i32) -> (i32, i32, i32) {
    %c0_i32 = arith.constant 0 : i32
    %c0_i32_0 = arith.constant 0 : i32
    return %arg0, %arg1, %c0_i32 : i32, i32, i32
  }
}

</mosaic_0001>

<bundles_post_ra>
// kernel: tpu_custom_call.1
= control target key start
LH: loop header
LB: loop body
LE: loop exit
PB: predicated region body
PF: predicated region fallthrough
CT: control target
= control target key end

     0   :  { %10 = vsyncpa [#allocation3], 0  ;;  %s1568_s0 = inlined_call_operand.vmem [shape: s8[2,128,128], index: 0, kind: input, shape index: {}]   ;;  %s1569_s1 = inlined_call_operand.vmem [shape: bf16[2,128,128], index: 1, kind: input, shape index: {}]   ;;  %s1570_s2 = inlined_call_operand.vmem [shape: f32[2,128,1], index: 2, kind: input, shape index: {}]   ;;  %s1571_s3 = inlined_call_operand.vmem [shape: f32[2,1,128], index: 3, kind: input, shape index: {}]   ;;  %s1572_s4 = inlined_call_operand.vmem [shape: f32[2,128,1], index: 4, kind: input, shape index: {}]   ;;  %s1573_s5 = inlined_call_operand.hbm [shape: f32[2,128,128], index: 5, kind: output, shape index: {}]  }
   0x1   :  { %12 = vsyncpa [#allocation3 + $0x1], 0  ;;  %s1283_s18 = smov 0   ;;  %s1285_s19 = smov 0  }
   0x2   :  { %s1287_s20 = smov 0   ;;  %s1289_s21 = smov 0  }
   0x3   :  { %s1291_s22 = smov 0   ;;  %s1293_s23 = smov 0  }
   0x4   :  { %s1295_s24 = smov 0   ;;  %s1297_s25 = smov 0  }
   0x5 LB: > { %s952_s26 = sadd.s32 4294967295, %s1247_s25   ;;  %s953_s27 = sadd.s32 4294967294, %s1247_s25   ;;  %s1247_s25 = sphi %s1297_s25, %s18_s25   ;;  %s1243_s24 = sphi %s1295_s24, %s1593_s24   ;;  %s1239_s23 = sphi %s1293_s23, %s1592_s23   ;;  %s1235_s22 = sphi %s1291_s22, %s1591_s22   ;;  %s1231_s21 = sphi %s1289_s21, %s1590_s21   ;;  %s1227_s20 = sphi %s1287_s20, %s1589_s20   ;;  %s1223_s19 = sphi %s1285_s19, %s1588_s19   ;;  %s1219_s18 = sphi %s1283_s18, %s1587_s18  }
   0x6   : > { %s27_s28 = sadd.s32 1, %s1239_s23  ;;  %s30_s29 = sadd.s32 1, %s1243_s24 }
   0x7   : > { %p28_p0 = scmp.ge.s32.totalorder %s27_s28, 2  ;;  %p185_p1 = scmp.ne.s32.totalorder %s1227_s20, %s1223_s19 }
   0x8   : > { %p186_p2 = scmp.eq.s32.totalorder %s952_s26, 3  ;;  %p191_p5 = scmp.ne.s32.totalorder %s1223_s19, %s1219_s18 }
   0x9   : > { %s1595_s28 = smov (%p28_p0, %s27_s28), 0  ;;  %s1597_s29 = smov (!%p28_p0, %s30_s29), %s1243_s24 }
   0xa   : > { %s171_s30 = ssub.s32 %s1239_s23, %s1595_s28  ;;  %p1334_p3 = por %p186_p2, %p185_p1 }
   0xb   : > { %p32_p4 = scmp.ge.s32.totalorder %s1597_s29, 2  ;;  %p192_p6 = scmp.eq.s32.totalorder %s953_s27, 3 }
   0xc   : > { %p956_p7 = scmp.ge.s32.totalorder %s1247_s25, 1  ;;  %p263_p9 = scmp.lt.s32.totalorder %s1247_s25, 5 }
   0xd   : > { %s1599_s29 = smov (%p32_p4, %s1597_s29), 0  ;;  %p1343_p8 = por %p192_p6, %p191_p5 }
   0xe   : > { %1576 = sst [smem:[#allocation5_spill]] %s1599_s29  ;;  %s170_s8 = ssub.s32 %s1243_s24, %s1599_s29 }
   0xf   : > { %s175_s9 = sadd.s32 1, %s1227_s20  ;;  %s172_s10 = sor.u32 %s171_s30, %s170_s8 }
  0x10   : > { %p264_p10 = pnand %p956_p7, %p263_p9  ;;  %p173_p11 = scmp.eq.s32.totalorder %s172_s10, 0 }
  0x11   : > { %p322_p12 = scmp.lt.s32.totalorder (!%p264_p10), %s1235_s22, 1  ;;  %s1356_s12 = sshll.u32 (!%p264_p10), %s1231_s21, 3  ;;  %v1249_v0 = vmov (!%p264_p10), 0  }
  0x12   : > { %s1352_s11 = scalar_select %p173_p11, %s1227_s20, %s175_s9  }
  0x13   : > { %267 = sbr.rel (%p264_p10) target bundleno = 862 (0x35e), region = 40  ;;  %1112 = vset.pattern.permute.xlu1 (!%p264_p10), %v1249_v0  ;;  %1111 = vset.pattern.permute.xlu0 (!%p264_p10), %v1249_v0  ;;  %p339_p13 = scmp.lt.s32.totalorder (!%p264_p10), %s1356_s12, 15 }
  0x14   : > { %s958_s27 = sshll.u32 (!%p264_p10), %s1231_s21, 1  ;;  %s1250_s21 = smov (!%p264_p10), [#allocation2]  }
  0x15   : > { %p324_p0 = scmp.lt.s32.totalorder (!%p264_p10), %s958_s27, 3 }
  0x1a   : > { %s1362_s13 = scalar_select %p322_p12, %s1235_s22, 1 }
  0x1b   : > { %s340_s14 = scalar_select %p339_p13, %s1356_s12, 15 }
  0x1c   : > { %s964_s15 = sshll.u32 %s1362_s13, 4  ;;  %s984_s8 = sshll.u32 %s1362_s13, 6 }
  0x1d   : > { %s1366_s16 = sadd.s32 %s964_s15, %s340_s14  ;;  %s1378_s29 = scalar_lea.vmem %s1569_s1, %s984_s8 }
  0x1e   : > { %s965_s17 = sshll.u32 %s1366_s16, 3  ;;  %s348_s26 = scalar_lea.vmem %s1571_s3, %s1362_s13 }
  0x1f   : > { %s344_s30 = scalar_lea.vmem %s1570_s2, %s965_s17  ;;  %v969_v9 = vld [vmem:[%s348_s26] ss:$0 sm:$0xff]  ;;  %s1601_s27 = smov (!%p324_p0, %s958_s27), 3 }
  0x20   : > { %v385_v1 = vld [vmem:[%s344_s30 + $0x20] sm:$0xff]  ;;  %v386_v3 = vld [vmem:[%s344_s30 + $0x28] sm:$0xff]  ;;  %v384_v5 = vld [vmem:[%s344_s30 + $0x18] sm:$0xff]  ;;  %s1484_s26 = scalar_lea.vmem %s1572_s4, %s965_s17  ;;  %s980_s16 = sshll.u32 %s1235_s22, 4 }
  0x21   : > { %v381_v2 = vld [vmem:[%s344_s30] sm:$0xff]  ;;  %420 = vperm.xlu1 %1112, %v385_v1   ;;  %v382_v4 = vld [vmem:[%s344_s30 + $0x8] sm:$0xff]  ;;  %v383_v6 = vld [vmem:[%s344_s30 + $0x10] sm:$0xff] }
  0x22   : > { %400 = vperm.xlu0 %1111, %v381_v2   ;;  %v388_v7 = vld [vmem:[%s344_s30 + $0x38] sm:$0xff]  ;;  %v387_v8 = vld [vmem:[%s344_s30 + $0x30] sm:$0xff]  ;;  %s959_s30 = sshll.u32 %s1362_s13, 2  ;;  %s1157_s13 = sshll.u32 %s1250_s21, 4  ;;  %s1158_s13 = int_to_ptr.vmem [resolvable:$false] %s1157_s13 }
  0x23   : > { %s327_s8 = sadd.s32 %s959_s30, %s1601_s27  ;;  %s810_s27 = sadd.s32 %s980_s16, %s1356_s12 }
  0x24   : > { %s960_s9 = sshll.u32 %s327_s8, 3  ;;  %s981_s30 = sshll.u32 %s810_s27, 7 }
  0x25   : > { %425 = vperm.xlu1 %1112, %v386_v3   ;;  %s329_s15 = scalar_lea.vmem %s1568_s0, %s960_s9 }
  0x26   : > { %405 = vperm.xlu0 %1111, %v382_v4   ;;  %v363_v42 = vld [vmem:[%s329_s15] sm:$0xff]  ;;  %v364_v43 = vld [vmem:[%s329_s15 + $0x8] sm:$0xff]  ;;  %s1512_s15 = scalar_lea.hbm %s1573_s5, %s981_s30 }
  0x27   : > { %vm508_vm0 = vnez %v363_v42  ;;  %vm509_vm1 = vnez %v364_v43 }
  0x28   : > { %v510_v44 = vsel %vm508_vm0, 16843009, %v1249_v0  ;;  %v511_v46 = vsel %vm509_vm1, 16843009, %v1249_v0 }
  0x29   : > { %415 = vperm.xlu1 %1112, %v384_v5   ;;  %v512_v45 = vunpack.c.0.s8 %v510_v44  ;;  %v513_v48 = vunpack.c.1.s8 %v510_v44  ;;  %v516_v49 = vunpack.c.0.s8 %v511_v46  ;;  %v517_v53 = vunpack.c.1.s8 %v511_v46 }
  0x2a   : > { %410 = vperm.xlu0 %1111, %v383_v6   ;;  %v514_v54 = vunpack.c.2.s8 %v510_v44  ;;  %v518_v62 = vunpack.c.2.s8 %v511_v46  ;;  %v515_v2 = vunpack.c.3.s8 %v510_v44  ;;  %v1116_v6 = vld [vmem:[%s1378_s29 + $0x18] sm:$0xff]  }
  0x2b   : > { %v520_v47 = vpack.c.b16 %v512_v45, %v512_v45  ;;  %v522_v51 = vpack.c.b16 %v513_v48, %v513_v48  ;;  %v528_v52 = vpack.c.b16 %v516_v49, %v516_v49  ;;  %v530_v59 = vpack.c.b16 %v517_v53, %v517_v53 }
  0x2c   : > { %v524_v60 = vpack.c.b16 %v514_v54, %v514_v54 }
  0x2d   : > { %435 = vperm.xlu1 %1112, %v388_v7   ;;  %v521_v50 = vpack.c.b8 %v520_v47, %v520_v47  ;;  %v523_v57 = vpack.c.b8 %v522_v51, %v522_v51  ;;  %v529_v58 = vpack.c.b8 %v528_v52, %v528_v52  ;;  %v531_v7 = vpack.c.b8 %v530_v59, %v530_v59 }
  0x2e   : > { %430 = vperm.xlu0 %1111, %v387_v8   ;;  %v525_v8 = vpack.c.b8 %v524_v60, %v524_v60 }
  0x2f   : > { %vm536_vm2 = vnez %v521_v50  ;;  %vm537_vm3 = vnez %v523_v57  ;;  %vm1415_vm4 = vnez %v529_v58  ;;  %vm1425_vm5 = vnez %v531_v7  ;;  %v390_v7 = vld [vmem:[%s1484_s26] sm:$0xff] }
  0x30   : > { %v544_v5 = vsel %vm536_vm2, 16843009, %v1249_v0  ;;  %vm1429_vm6 = vnez %v525_v8  ;;  %v592_v8 = vsub.f32 1.0, %v390_v7 }
  0xa0   : > { %v421_v10 = vpop.permute.xlu1 %420 }
  0xa1   : > { %v401_v11 = vpop.permute.xlu0 %400  ;;  %v448_v12 = vadd.f32 %v969_v9, %v421_v10 }
  0xa2   : > { %v444_v13 = vadd.f32 %v969_v9, %v401_v11  ;;  %v532_v11 = vpack.c.b16 %v518_v62, %v518_v62 }
  0xa3   : > { %v456_v17 = vmul.f32 0.2, %v448_v12 }
  0xa4   : > { %v452_v14 = vmul.f32 0.2, %v444_v13  ;;  %v426_v15 = vpop.permute.xlu1 %425 }
  0xa5   : > { %v406_v16 = vpop.permute.xlu0 %405  ;;  %v449_v18 = vadd.f32 %v969_v9, %v426_v15  ;;  %v1384_v27 = vmax.f32 %v448_v12, %v456_v17  ;;  %v519_v12 = vunpack.c.3.s8 %v511_v46  ;;  %v552_v15 = vunpack.c.0.s8 %v544_v5  ;;  %v1115_v5 = vld [vmem:[%s1378_s29 + $0x10] sm:$0xff]  }
  0xa6   : > { %v445_v19 = vadd.f32 %v969_v9, %v406_v16  ;;  %v460_v20 = vmax.f32 %v444_v13, %v452_v14  ;;  %v526_v16 = vpack.c.b16 %v515_v2, %v515_v2 }
  0xa7   : > { %v457_v22 = vmul.f32 0.2, %v449_v18  ;;  %vm1433_vm7 = vcmp.ne.s32.totalorder %v552_v15, 0 }
  0xa8   : > { %v453_v21 = vmul.f32 0.2, %v445_v19  ;;  %468 = vmax.xlane.f32.xlu0 %v460_v20  ;;  %v416_v23 = vpop.permute.xlu1 %415 }
  0xa9   : > { %v411_v24 = vpop.permute.xlu0 %410  ;;  %v447_v25 = vadd.f32 %v969_v9, %v416_v23  ;;  %v1390_v32 = vmax.f32 %v449_v18, %v457_v22 }
  0xaa   : > { %v446_v26 = vadd.f32 %v969_v9, %v411_v24  ;;  %v1386_v28 = vmax.f32 %v445_v19, %v453_v21  ;;  %v545_v19 = vsel %vm537_vm3, 16843009, %v1249_v0 }
  0xab   : > { %v455_v33 = vmul.f32 0.2, %v447_v25 }
  0xac   : > { %v454_v29 = vmul.f32 0.2, %v446_v26  ;;  %476 = vmax.xlane.f32.xlu0 %v1384_v27  ;;  %470 = vmax.xlane.f32.xlu1 %v1386_v28  ;;  %v436_v30 = vpop.permute.xlu1 %435 }
  0xad   : > { %v431_v31 = vpop.permute.xlu0 %430  ;;  %v451_v34 = vadd.f32 %v969_v9, %v436_v30  ;;  %v1396_v39 = vmax.f32 %v447_v25, %v455_v33  ;;  %v533_v25 = vpack.c.b8 %v532_v11, %v532_v11  ;;  %v527_v30 = vpack.c.b8 %v526_v16, %v526_v16  ;;  %v395_v16 = vld [vmem:[%s1484_s26 + $0x28] sm:$0xff] }
  0xae   : > { %v450_v35 = vadd.f32 %v969_v9, %v431_v31  ;;  %v1392_v36 = vmax.f32 %v446_v26, %v454_v29  ;;  %v534_v26 = vpack.c.b16 %v519_v12, %v519_v12  ;;  %v553_v33 = vunpack.c.0.s8 %v545_v19 }
  0xaf   : > { %v459_v38 = vmul.f32 0.2, %v451_v34  ;;  %vm542_vm8 = vnez %v533_v25  ;;  %vm539_vm9 = vnez %v527_v30  ;;  %v597_v22 = vsub.f32 1.0, %v395_v16 }
  0xb0   : > { %v458_v37 = vmul.f32 0.2, %v450_v35  ;;  %478 = vmax.xlane.f32.xlu0 %v1390_v32  ;;  %472 = vmax.xlane.f32.xlu1 %v1392_v36  ;;  %v535_v43 = vpack.c.b8 %v534_v26, %v534_v26  ;;  %vm561_vm10 = vcmp.ne.s32.totalorder %v553_v33, 0  ;;  %v550_v47 = vsel %vm542_vm8, 16843009, %v1249_v0  ;;  %v396_v26 = vld [vmem:[%s1484_s26 + $0x30] sm:$0xff] }
  0xb1   : > { %v1402_v41 = vmax.f32 %v451_v34, %v459_v38  ;;  %v547_v50 = vsel %vm539_vm9, 16843009, %v1249_v0  ;;  %v558_v53 = vunpack.c.0.s8 %v550_v47  ;;  %v598_v33 = vsub.f32 1.0, %v396_v26  ;;  %v1117_v47 = vld [vmem:[%s1378_s29 + $0x20] sm:$0xff]  }
  0xb2   : > { %v1398_v40 = vmax.f32 %v450_v35, %v458_v37  ;;  %v549_v35 = vsel %vm1425_vm5, 16843009, %v1249_v0  ;;  %vm543_vm12 = vnez %v535_v43  ;;  %v555_v54 = vunpack.c.0.s8 %v547_v50 }
  0xb3   : > { %v557_v46 = vunpack.c.0.s8 %v549_v35  ;;  %vm566_vm15 = vcmp.ne.s32.totalorder %v558_v53, 0 }
  0xb4   : > { %474 = vmax.xlane.f32.xlu0 %v1396_v39  ;;  %480 = vmax.xlane.f32.xlu1 %v1398_v40  ;;  %vm563_vm0 = vcmp.ne.s32.totalorder %v555_v54, 0  ;;  %v1118_v54 = vld [vmem:[%s1378_s29 + $0x28] sm:$0xff]  }
  0xb5   : > { %vm565_vm14 = vcmp.ne.s32.totalorder %v557_v46, 0 }
  0xb8   : > { %482 = vmax.xlane.f32.xlu0 %v1402_v41 }
 0x135   : > { %v469_v55 = vpop.xlane.xlu0 %468 }
 0x136   : > { %v484_v56 = vsub.f32 %v460_v20, %v469_v55  ;;  %v548_v20 = vsel %vm1415_vm4, 16843009, %v1249_v0  ;;  %v551_v55 = vsel %vm543_vm12, 16843009, %v1249_v0 }
 0x137   : > { %v556_v34 = vunpack.c.0.s8 %v548_v20  ;;  %v559_v60 = vunpack.c.0.s8 %v551_v55 }
 0x138   : > { %v492_v61 = vmul.f32 1.442695, %v484_v56 }
 0x139   : > { %v471_v63 = vpop.xlane.xlu1 %470  ;;  %v477_v1 = vpop.xlane.xlu0 %476  ;;  %vm564_vm11 = vcmp.ne.s32.totalorder %v556_v34, 0  ;;  %vm567_vm1 = vcmp.ne.s32.totalorder %v559_v60, 0  ;;  %v397_v34 = vld [vmem:[%s1484_s26 + $0x38] sm:$0xff] }
 0x13a   : > { %1121 = vpow2.f32 %v492_v61  ;;  %v485_v3 = vsub.f32 %v1386_v28, %v471_v63  ;;  %v488_v4 = vsub.f32 %v1384_v27, %v477_v1 }
 0x13c   : > { %v494_v9 = vmul.f32 1.442695, %v485_v3  ;;  %v500_v10 = vmul.f32 1.442695, %v488_v4  ;;  %v1113_v3 = vld [vmem:[%s1378_s29] sm:$0xff]   ;;  %v1114_v4 = vld [vmem:[%s1378_s29 + $0x8] sm:$0xff]  }
 0x13d   : > { %v473_v13 = vpop.xlane.xlu1 %472  ;;  %v479_v14 = vpop.xlane.xlu0 %478  ;;  %997 = vmatprep.subr.bf16.mxu0 %v1113_v3  ;;  %1021 = vmatprep.subr.bf16.mxu1 %v1113_v3 }
 0x13e   : > { %1123 = vpow2.f32 %v494_v9  ;;  %v486_v17 = vsub.f32 %v1392_v36, %v473_v13  ;;  %v489_v18 = vsub.f32 %v1390_v32, %v479_v14  ;;  %v546_v36 = vsel %vm1429_vm6, 16843009, %v1249_v0  ;;  %998 = vmatpush3.bf16.msra.mxu0 %v1113_v3  ;;  %1029 = vmatpush3.bf16.msra.mxu1 %v1113_v3  ;;  %v391_v9 = vld [vmem:[%s1484_s26 + $0x8] sm:$0xff] }
 0x13f   : > { %1125 = vpow2.f32 %v500_v10  ;;  %v554_v45 = vunpack.c.0.s8 %v546_v36  ;;  %999 = vmatprep.subr.bf16.mxu0 %v1114_v4  ;;  %1022 = vmatprep.subr.bf16.mxu1 %v1114_v4  ;;  %v394_v10 = vld [vmem:[%s1484_s26 + $0x20] sm:$0xff]  ;;  %v593_v13 = vsub.f32 1.0, %v391_v9 }
 0x140   : > { %v496_v23 = vmul.f32 1.442695, %v486_v17  ;;  %v502_v24 = vmul.f32 1.442695, %v489_v18  ;;  %v596_v14 = vsub.f32 1.0, %v394_v10  ;;  %v392_v17 = vld [vmem:[%s1484_s26 + $0x10] sm:$0xff] }
 0x141   : > { %v481_v27 = vpop.xlane.xlu1 %480  ;;  %v475_v28 = vpop.xlane.xlu0 %474  ;;  %vm562_vm13 = vcmp.ne.s32.totalorder %v554_v45, 0 }
 0x142   : > { %1127 = vpow2.f32 %v496_v23  ;;  %v490_v31 = vsub.f32 %v1398_v40, %v481_v27  ;;  %v487_v32 = vsub.f32 %v1396_v39, %v475_v28  ;;  %1000 = vmatpush3.bf16.msra.mxu0 %v1114_v4  ;;  %1030 = vmatpush3.bf16.msra.mxu1 %v1114_v4  ;;  %v594_v23 = vsub.f32 1.0, %v392_v17 }
 0x143   : > { %1129 = vpow2.f32 %v502_v24  ;;  %1001 = vmatprep.subr.bf16.mxu0 %v1115_v5  ;;  %1023 = vmatprep.subr.bf16.mxu1 %v1115_v5  ;;  %v393_v24 = vld [vmem:[%s1484_s26 + $0x18] sm:$0xff]  ;;  %s1159_s26 = scalar_lea.vmem %s1158_s13, 2048 }
 0x144   : > { %v1122_v37 = vpop.eup %1121  ;;  %v504_v38 = vmul.f32 1.442695, %v490_v31  ;;  %v498_v42 = vmul.f32 1.442695, %v487_v32  ;;  %v595_v30 = vsub.f32 1.0, %v393_v24 }
 0x145   : > { %v483_v44 = vpop.xlane.xlu0 %482  ;;  %v1447_v39 = vsel %vm1433_vm7, %v1122_v37, 0.0 }
 0x146   : > { %1131 = vpow2.f32 %v504_v38  ;;  %v491_v40 = vsub.f32 %v1402_v41, %v483_v44  ;;  %576 = vadd.xlane.f32.xlu1 %v1447_v39  ;;  %1002 = vmatpush3.bf16.msra.mxu0 %v1115_v5  ;;  %v599_v44 = vsub.f32 1.0, %v397_v34 }
 0x147   : > { %1133 = vpow2.f32 %v498_v42  ;;  %1031 = vmatpush3.bf16.msra.mxu1 %v1115_v5  ;;  %1003 = vmatprep.subr.bf16.mxu0 %v1116_v6 }
 0x148   : > { %v1124_v48 = vpop.eup %1123  ;;  %v506_v49 = vmul.f32 1.442695, %v491_v40  ;;  %1024 = vmatprep.subr.bf16.mxu1 %v1116_v6 }
 0x149   : > { %v1126_v51 = vpop.eup %1125  ;;  %v1453_v52 = vsel %vm561_vm10, %v1124_v48, 0.0 }
 0x14a   : > { %1135 = vpow2.f32 %v506_v49  ;;  %578 = vadd.xlane.f32.xlu0 %v1453_v52  ;;  %v1456_v41 = vsel %vm564_vm11, %v1126_v51, 0.0  ;;  %1004 = vmatpush3.bf16.msra.mxu0 %v1116_v6 }
 0x14b   : > { %584 = vadd.xlane.f32.xlu1 %v1456_v41  ;;  %1032 = vmatpush3.bf16.msra.mxu1 %v1116_v6 }
 0x14c   : > { %v1128_v56 = vpop.eup %1127  ;;  %1005 = vmatprep.subr.bf16.mxu0 %v1117_v47  ;;  %1025 = vmatprep.subr.bf16.mxu1 %v1117_v47 }
 0x14d   : > { %v1130_v57 = vpop.eup %1129  ;;  %v1460_v58 = vsel %vm562_vm13, %v1128_v56, 0.0  ;;  %v1119_v56 = vld [vmem:[%s1378_s29 + $0x30] sm:$0xff]  }
 0x14e   : > { %v1462_v59 = vsel %vm565_vm14, %v1130_v57, 0.0  ;;  %1006 = vmatpush3.bf16.msra.mxu0 %v1117_v47 }
 0x14f   : > { %586 = vadd.xlane.f32.xlu0 %v1462_v59  ;;  %580 = vadd.xlane.f32.xlu1 %v1460_v58 }
 0x150   : > { %v1132_v61 = vpop.eup %1131  ;;  %1033 = vmatpush3.bf16.msra.mxu1 %v1117_v47  ;;  %1007 = vmatprep.subr.bf16.mxu0 %v1118_v54 }
 0x151   : > { %v1134_v62 = vpop.eup %1133  ;;  %v1466_v63 = vsel %vm566_vm15, %v1132_v61, 0.0  ;;  %1026 = vmatprep.subr.bf16.mxu1 %v1118_v54  ;;  %v1120_v61 = vld [vmem:[%s1378_s29 + $0x38] sm:$0xff]   ;;  %s318_s29 = sand.u32 1, %s1223_s19  }
 0x152   : > { %v1468_v0 = vsel %vm563_vm0, %v1134_v62, 0.0  ;;  %1008 = vmatpush3.bf16.msra.mxu0 %v1118_v54  ;;  %s957_s17 = sshll.u32 %s318_s29, 6  ;;  %s1516_s22 = scalar_lea.sflag [#allocation3], %s318_s29 }
 0x153   : > { %582 = vadd.xlane.f32.xlu0 %v1468_v0  ;;  %588 = vadd.xlane.f32.xlu1 %v1466_v63  ;;  %s320_s8 = scalar_lea.vmem [#allocation2], %s957_s17 }
 0x154   : > { %v1136_v1 = vpop.eup %1135  ;;  %1034 = vmatpush3.bf16.msra.mxu1 %v1118_v54  ;;  %1009 = vmatprep.subr.bf16.mxu0 %v1119_v56  ;;  %s813_s9 = sshll.u32 %s320_s8, 4  ;;  %s1514_s9 = int_to_ptr.vmem [resolvable:$true] %s813_s9 }
 0x155   : > { %v1472_v2 = vsel %vm567_vm1, %v1136_v1, 0.0  ;;  %1027 = vmatprep.subr.bf16.mxu1 %v1119_v56  ;;  %s1153_s12 = scalar_lea.vmem %s1514_s9, 1024  ;;  %p1160_p5 = scmp.lt.s32.totalorder %s1514_s9, %s1158_s13 }
 0x156   : > { %1010 = vmatpush3.bf16.msra.mxu0 %v1119_v56  ;;  %p1154_p1 = scmp.ne.s32.totalorder %s1514_s9, %s1153_s12  ;;  %p1161_p6 = scmp.lt.s32.totalorder %s1159_s26, %s1153_s12 }
 0x157   : > { %590 = vadd.xlane.f32.xlu0 %v1472_v2  ;;  %1011 = vmatprep.subr.bf16.mxu0 %v1120_v61 }
 0x158   : > { %1035 = vmatpush3.bf16.msra.mxu1 %v1119_v56  ;;  %p1155_p2 = pnand %p1154_p1, %p1334_p3  ;;  %p1162_p7 = por %p1161_p6, %p1160_p5 }
 0x159   : > { %1028 = vmatprep.subr.bf16.mxu1 %v1120_v61 }
 0x15a   : > { %1012 = vmatpush3.bf16.msra.mxu0 %v1120_v61  ;;  %p1156_p4 = pneg %p1155_p2 }
 0x15c   : > { %1036 = vmatpush3.bf16.msra.mxu1 %v1120_v61  ;;  %p1163_p9 = pnand %p1162_p7, %p1156_p4 }
 0x1d3   : > { %v577_v11 = vpop.xlane.xlu1 %576 }
 0x1d4   : > { %v600_v12 = vadd.f32 %v592_v8, %v577_v11 }
 0x1d6   : > { %v608_v15 = vadd.f32 1e-06, %v600_v12 }
 0x1d7   : > { %v579_v18 = vpop.xlane.xlu0 %578 }
 0x1d8   : > { %1137 = vrcp.f32 %v608_v15  ;;  %v601_v19 = vadd.f32 %v593_v13, %v579_v18  ;;  %v585_v20 = vpop.xlane.xlu1 %584 }
 0x1d9   : > { %v604_v21 = vadd.f32 %v596_v14, %v585_v20 }
 0x1da   : > { %v609_v25 = vadd.f32 1e-06, %v601_v19 }
 0x1db   : > { %v612_v27 = vadd.f32 1e-06, %v604_v21 }
 0x1dc   : > { %1139 = vrcp.f32 %v609_v25  ;;  %v587_v28 = vpop.xlane.xlu0 %586  ;;  %v581_v29 = vpop.xlane.xlu1 %580 }
 0x1dd   : > { %1141 = vrcp.f32 %v612_v27  ;;  %v605_v31 = vadd.f32 %v597_v22, %v587_v28  ;;  %v602_v32 = vadd.f32 %v594_v23, %v581_v29 }
 0x1df   : > { %v613_v35 = vadd.f32 1e-06, %v605_v31  ;;  %v610_v36 = vadd.f32 1e-06, %v602_v32 }
 0x1e0   : > { %v583_v37 = vpop.xlane.xlu0 %582  ;;  %v589_v38 = vpop.xlane.xlu1 %588 }
 0x1e1   : > { %1143 = vrcp.f32 %v613_v35  ;;  %v603_v42 = vadd.f32 %v595_v30, %v583_v37  ;;  %v606_v43 = vadd.f32 %v598_v33, %v589_v38 }
 0x1e2   : > { %v1138_v40 = vpop.eup %1137  ;;  %1145 = vrcp.f32 %v610_v36 }
 0x1e3   : > { %v611_v45 = vadd.f32 1e-06, %v603_v42  ;;  %v614_v46 = vadd.f32 1e-06, %v606_v43  ;;  %626 = vperm.xlu1 %1112, %v1138_v40  }
 0x1e4   : > { %v591_v48 = vpop.xlane.xlu0 %590 }
 0x1e5   : > { %1147 = vrcp.f32 %v611_v45  ;;  %v607_v49 = vadd.f32 %v599_v44, %v591_v48 }
 0x1e6   : > { %v1140_v50 = vpop.eup %1139  ;;  %1149 = vrcp.f32 %v614_v46 }
 0x1e7   : > { %v1142_v51 = vpop.eup %1141  ;;  %v615_v53 = vadd.f32 1e-06, %v607_v49  ;;  %631 = vperm.xlu0 %1111, %v1140_v50  }
 0x1e8   : > { %646 = vperm.xlu1 %1112, %v1142_v51  }
 0x1e9   : > { %1151 = vrcp.f32 %v615_v53 }
 0x1eb   : > { %v1144_v55 = vpop.eup %1143 }
 0x1ec   : > { %v1146_v57 = vpop.eup %1145  ;;  %651 = vperm.xlu1 %1112, %v1144_v55  }
 0x1ed   : > { %636 = vperm.xlu0 %1111, %v1146_v57  }
 0x1ef   : > { %v1148_v60 = vpop.eup %1147 }
 0x1f0   : > { %v1150_v62 = vpop.eup %1149  ;;  %641 = vperm.xlu1 %1112, %v1148_v60  }
 0x1f1   : > { %656 = vperm.xlu0 %1111, %v1150_v62  }
 0x1f3   : > { %v1152_v1 = vpop.eup %1151 }
 0x1f4   : > { %661 = vperm.xlu1 %1112, %v1152_v1  }
 0x262   : > { %v627_v3 = vpop.permute.xlu1 %626 }
 0x263   : > { %v664_v5 = vmul.f32 %v627_v3, %v1447_v39 }
 0x266   : > { %v632_v4 = vpop.permute.xlu0 %631 }
 0x267   : > { %v665_v6 = vmul.f32 %v632_v4, %v1453_v52  ;;  %v647_v7 = vpop.permute.xlu1 %646 }
 0x268   : > { %v668_v10 = vmul.f32 %v647_v7, %v1456_v41 }
 0x269   : > { %v672_v8 = vpack.c.bf16 %v665_v6, %v664_v5 }
 0x26b   : > { %v652_v9 = vpop.permute.xlu1 %651  ;;  %1013 = vmatprep.mubr.bf16.mxu0 %v672_v8 }
 0x26c   : > { %v637_v11 = vpop.permute.xlu0 %636  ;;  %v669_v12 = vmul.f32 %v652_v9, %v1462_v59 }
 0x26d   : > { %v666_v15 = vmul.f32 %v637_v11, %v1460_v58 }
 0x26e   : > { %v674_v13 = vpack.c.bf16 %v669_v12, %v668_v10 }
 0x26f   : > { %v642_v14 = vpop.permute.xlu1 %641 }
 0x270   : > { %v667_v39 = vmul.f32 %v642_v14, %v1468_v0  ;;  %1017 = vmatprep.mubr.bf16.mxu1 %v674_v13  ;;  %v657_v52 = vpop.permute.xlu0 %656 }
 0x271   : > { %v670_v18 = vmul.f32 %v657_v52, %v1466_v63 }
 0x272   : > { %v673_v16 = vpack.c.bf16 %v667_v39, %v666_v15 }
 0x273   : > { %v662_v17 = vpop.permute.xlu1 %661 }
 0x274   : > { %v671_v41 = vmul.f32 %v662_v17, %v1472_v2  ;;  %1014 = vmatmul.mubr.bf16.vlgmr.msra.gmra.mrb[0].mxu0 %v673_v16 }
 0x276   : > { %v675_v19 = vpack.c.bf16 %v671_v41, %v670_v18 }
 0x278   : > { %1018 = vmatmul.mubr.bf16.vlgmr.msra.gmra.mrb[0].mxu1 %v675_v19 }
 0x347   : > { %v1015_v59 = vpop.f32.mrb[0].mxu0 }
 0x348   : > { %791 = vst [vmem:[%s320_s8 + $0x10] sm:$0xff] %v1015_v59  ;;  %v758_v58 = vpop.f32.mrb[1].mxu0 }
 0x349   : > { %789 = vst [vmem:[%s320_s8] sm:$0xff] %v758_v58  ;;  %v1016_v0 = vpop.f32.mrb[2].mxu0 }
 0x34a   : > { %792 = vst [vmem:[%s320_s8 + $0x18] sm:$0xff] %v1016_v0  ;;  %v761_v63 = vpop.f32.mrb[3].mxu0 }
 0x34b   : > { %790 = vst [vmem:[%s320_s8 + $0x8] sm:$0xff] %v761_v63  ;;  %v1019_v2 = vpop.f32.mrb[0].mxu1 }
 0x34c   : > { %795 = vst [vmem:[%s320_s8 + $0x30] sm:$0xff] %v1019_v2  ;;  %v774_v20 = vpop.f32.mrb[1].mxu1 }
 0x34d   : > { %793 = vst [vmem:[%s320_s8 + $0x20] sm:$0xff] %v774_v20  ;;  %v1020_v21 = vpop.f32.mrb[2].mxu1 }
 0x34e   : > { %796 = vst [vmem:[%s320_s8 + $0x38] sm:$0xff] %v1020_v21  ;;  %v777_v22 = vpop.f32.mrb[3].mxu1 }
 0x34f   : > { %794 = vst [vmem:[%s320_s8 + $0x28] sm:$0xff] %v777_v22 }
 0x350   : > { %1166 = shalt.err (!%p1163_p9)
}
 0x351   : > { %s1167_s29 = scalar_lea.hbm %s1512_s15, 1024  ;;  %s1171_s27 = scalar_lea.hbm %s1573_s5, 4096 }
 0x352   : > { %p1168_p10 = scmp.ne.s32.totalorder %s1512_s15, %s1167_s29  ;;  %p1172_p13 = scmp.lt.u32.totalorder %s1512_s15, %s1573_s5 }
 0x353   : > { %p1173_p0 = scmp.lt.u32.totalorder %s1171_s27, %s1167_s29  ;;  %p1175_p2 = scmp.lt.u32.totalorder %s1167_s29, %s1512_s15 }
 0x354   : > { %p1169_p11 = pnand %p1168_p10, %p1334_p3 }
 0x355   : > { %p1174_p1 = por %p1173_p0, %p1172_p13 }
 0x356   : > { %p1170_p12 = pneg %p1169_p11 }
 0x357   : > { %p1176_p4 = por %p1175_p2, %p1174_p1 }
 0x359   : > { %p1177_p5 = pnand %p1176_p4, %p1170_p12 }
 0x35b   : > { %1180 = shalt.err (!%p1177_p5)
}
 0x35c   : > { %s1251_s10 = smov 128   ;;  %s1252_s14 = smov 8  }
 0x35d   : > { %1037 = dma.vmem_to_hbm [thread:$0]  (%p1334_p3), %s1514_s9, 1024, %s1512_s15, %s1516_s22, %s1251_s10, %s1251_s10, %s1252_s14  }
 0x35e PF: > { %p1043_p6 = scmp.ge.s32.totalorder %s1247_s25, 2  ;;  %s828_s12 = sand.u32 1, %s1219_s18  }
 0x35f   : > { %s829_s21 = scalar_lea.sflag [#allocation3], %s828_s12 }
 0x360   : > { %p1040_p7 = pnand %p1043_p6, %p1343_p8 }
 0x362   : > { %1214 = dma.done.wait (!%p1040_p7), %s829_s21, 1024  }
 0x363   : > { %1216 = vsyncadd (!%p1040_p7), %s829_s21, 4294966272  ;;  %s18_s25 = sadd.s32 1, %s1247_s25   ;;  %s1586_s6 = sld [smem:[#allocation5_spill]] }
 0x364   : > { %p15_p9 = scmp.ge.s32.totalorder %s18_s25, 6   ;;  %s1587_s18 = smov %s1223_s19 }
 0x365   : > { %s1588_s19 = smov %s1227_s20  ;;  %s1589_s20 = smov %s1352_s11 }
 0x366   : > { %s1590_s21 = smov %s1239_s23  ;;  %s1591_s22 = smov %s1243_s24 }
 0x367   : > { %s1592_s23 = smov %s1595_s28  ;;  %17 = sbr.rel (!%p15_p9) target bundleno = 5 (0x5), region = 87 }
 0x369   : > { %s1593_s24 = smov %s1586_s6 }
 0x36e   :  { %834 = vsyncpa [#allocation3], 1 }
 0x36f   :  { %836 = vsyncpa [#allocation3 + $0x1], 1 }

</bundles_post_ra>
